<compile_context>
chip_gen: v5e
topology: v5e:2x2
jax: 0.10.0
libtpu: 0.0.40
codegen_flags: <defaults>
</compile_context>

<pallas_src>
import functools

import jax
import jax.numpy as jnp
from jax import lax
from jax.experimental import pallas as pl
from jax.experimental.pallas import tpu as pltpu


_VMEM = pl.BlockSpec(memory_space=pltpu.MemorySpace.VMEM)


# ----------------------------------------------------------------------------
# Pallas kernels
# ----------------------------------------------------------------------------

def _matmul_bias_kernel(x_ref, w_ref, b_ref, o_ref, *, activation=None):
    # x: (M, K), w: (K, N) pre-transposed, b: (1, N)
    y = jnp.dot(x_ref[...], w_ref[...], preferred_element_type=jnp.float32)
    y = y + b_ref[...]
    if activation == "tanh":
        y = jnp.tanh(y)
    o_ref[...] = y.astype(o_ref.dtype)


def _conv_inproj_kernel(p_ref, wc_ref, bc_ref, wg_ref, bg_ref, o_ref):
    # Fused: conv1d-as-matmul followed by the LSTM-1 (fwd|bwd) input projection.
    # p:  (T*B, C*K)  im2col patches (time-major rows)
    # wc: (C*K, 16)   conv weight, pre-transposed
    # wg: (16, 8H)    concat(W_ih_fwd, W_ih_bwd)^T
    conved = jnp.dot(p_ref[...], wc_ref[...],
                     preferred_element_type=jnp.float32) + bc_ref[...]
    gx = jnp.dot(conved, wg_ref[...],
                 preferred_element_type=jnp.float32) + bg_ref[...]
    o_ref[...] = gx.astype(o_ref.dtype)


def _head_kernel(x_ref, w1_ref, b1_ref, w2_ref, b2_ref, o_ref):
    # Fused fc_1 + tanh + fc_2.
    z = jnp.tanh(jnp.dot(x_ref[...], w1_ref[...],
                         preferred_element_type=jnp.float32) + b1_ref[...])
    y = jnp.dot(z, w2_ref[...], preferred_element_type=jnp.float32) + b2_ref[...]
    o_ref[...] = y.astype(o_ref.dtype)


def _bilstm_kernel(gx_ref, whhf_ref, whhb_ref, out_ref,
                   hf, cf, hb, cb, *, hidden, unroll):
    # gx:   (T, B, 8H)  precomputed input projections (+ biases):
    #                   lanes [0:4H) fwd gates, [4H:8H) bwd gates (i,f,g,o).
    # whhf/whhb: (H, 4H) pre-transposed recurrent weights.
    # out:  (T, B, 2H)  fwd hidden in lanes [0:H), bwd hidden in [H:2H).
    H = hidden
    T = out_ref.shape[0]

    hf[...] = jnp.zeros_like(hf)
    cf[...] = jnp.zeros_like(cf)
    hb[...] = jnp.zeros_like(hb)
    cb[...] = jnp.zeros_like(cb)

    whh_f = whhf_ref[...]
    whh_b = whhb_ref[...]

    def gate_step(gates, c_prev):
        i_g = jax.nn.sigmoid(gates[:, 0 * H:1 * H])
        f_g = jax.nn.sigmoid(gates[:, 1 * H:2 * H])
        g_g = jnp.tanh(gates[:, 2 * H:3 * H])
        o_g = jax.nn.sigmoid(gates[:, 3 * H:4 * H])
        c_new = f_g * c_prev + i_g * g_g
        h_new = o_g * jnp.tanh(c_new)
        return h_new, c_new

    def body(t, carry):
        tb = T - 1 - t
        # Only the recurrent term remains on the sequential critical path.
        gates_f = gx_ref[t, :, 0:4 * H] + jnp.dot(
            hf[...], whh_f, preferred_element_type=jnp.float32)
        gates_b = gx_ref[tb, :, 4 * H:8 * H] + jnp.dot(
            hb[...], whh_b, preferred_element_type=jnp.float32)
        h_f, c_f = gate_step(gates_f, cf[...])
        h_b, c_b = gate_step(gates_b, cb[...])
        hf[...] = h_f
        cf[...] = c_f
        hb[...] = h_b
        cb[...] = c_b
        out_ref[t, :, 0:H] = h_f
        out_ref[tb, :, H:2 * H] = h_b
        return carry

    lax.fori_loop(0, T, body, 0, unroll=unroll)


# ----------------------------------------------------------------------------
# pallas_call wrappers
# ----------------------------------------------------------------------------

def _pallas_matmul_bias(x, w_t, b, activation=None):
    M = x.shape[0]
    N = w_t.shape[1]
    return pl.pallas_call(
        functools.partial(_matmul_bias_kernel, activation=activation),
        out_shape=jax.ShapeDtypeStruct((M, N), jnp.float32),
        in_specs=[_VMEM, _VMEM, _VMEM],
        out_specs=_VMEM,
    )(x, w_t, b.reshape(1, N))


def _pallas_conv_inproj(patches, wc_t, bc, wg_t, bg):
    M = patches.shape[0]
    N = wg_t.shape[1]
    return pl.pallas_call(
        _conv_inproj_kernel,
        out_shape=jax.ShapeDtypeStruct((M, N), jnp.float32),
        in_specs=[_VMEM] * 5,
        out_specs=_VMEM,
    )(patches, wc_t, bc.reshape(1, -1), wg_t, bg.reshape(1, -1))


def _pallas_head(x, w1_t, b1, w2_t, b2):
    M = x.shape[0]
    N = w2_t.shape[1]
    return pl.pallas_call(
        _head_kernel,
        out_shape=jax.ShapeDtypeStruct((M, N), jnp.float32),
        in_specs=[_VMEM] * 5,
        out_specs=_VMEM,
    )(x, w1_t, b1.reshape(1, -1), w2_t, b2.reshape(1, -1))


def _pallas_bilstm(gx_tm, whh_f_t, whh_b_t, hidden):
    # gx_tm: (T, B, 8H) time-major precomputed gate inputs.
    # TODO(synk): for large B*T, stream gx/out over a T-grid (emit_pipeline)
    #             instead of whole-array VMEM residency (v7x 64 MiB / v5e
    #             16 MiB scoped limits); fine at these small shapes.
    T, B, _ = gx_tm.shape
    H = hidden
    unroll = T if T <= 8 else 8
    return pl.pallas_call(
        functools.partial(_bilstm_kernel, hidden=H, unroll=unroll),
        out_shape=jax.ShapeDtypeStruct((T, B, 2 * H), jnp.float32),
        in_specs=[_VMEM, _VMEM, _VMEM],
        out_specs=_VMEM,
        scratch_shapes=[pltpu.VMEM((B, H), jnp.float32) for _ in range(4)],
        compiler_params=pltpu.CompilerParams(vmem_limit_bytes=32 * 1024 * 1024),
    )(gx_tm, whh_f_t, whh_b_t)


def _lstm_cat_weights(p):
    # Concatenate fwd|bwd input weights and summed biases, pre-transposed.
    w_ih_t = jnp.concatenate([p["w_ih_f"], p["w_ih_b"]], axis=0).T   # (D, 8H)
    b_cat = jnp.concatenate([p["b_ih_f"] + p["b_hh_f"],
                             p["b_ih_b"] + p["b_hh_b"]], axis=0)     # (8H,)
    return w_ih_t, b_cat


# ----------------------------------------------------------------------------
# Parameter initialization (deterministic, PyTorch-like uniform init)
# ----------------------------------------------------------------------------

def _uniform(key, shape, bound):
    return jax.random.uniform(key, shape, jnp.float32, -bound, bound)


def init_params(key, sequence_length, ndim):
    keys = iter(jax.random.split(key, 64))
    p = {}

    k_conv = 1.0 / jnp.sqrt(ndim * 4.0)
    p["conv_w"] = _uniform(next(keys), (16, ndim, 4), k_conv)
    p["conv_b"] = _uniform(next(keys), (16,), k_conv)

    def lstm_params(input_size, hidden_size):
        bound = 1.0 / jnp.sqrt(float(hidden_size))
        d = {}
        for suf in ("f", "b"):
            d["w_ih_" + suf] = _uniform(next(keys), (4 * hidden_size, input_size), bound)
            d["w_hh_" + suf] = _uniform(next(keys), (4 * hidden_size, hidden_size), bound)
            d["b_ih_" + suf] = _uniform(next(keys), (4 * hidden_size,), bound)
            d["b_hh_" + suf] = _uniform(next(keys), (4 * hidden_size,), bound)
        return d

    p["lstm1"] = lstm_params(16, 64)        # bidirectional -> outputs 128
    p["lstm2"] = lstm_params(128, 128)      # bidirectional -> outputs 256

    fc1_in = sequence_length * 128 * 2
    k1 = 1.0 / jnp.sqrt(float(fc1_in))
    p["fc1_w"] = _uniform(next(keys), (128, fc1_in), k1)
    p["fc1_b"] = _uniform(next(keys), (128,), k1)
    k2 = 1.0 / jnp.sqrt(128.0)
    p["fc2_w"] = _uniform(next(keys), (1, 128), k2)
    p["fc2_b"] = _uniform(next(keys), (1,), k2)
    return p


# ----------------------------------------------------------------------------
# Forward pass (mirrors BiLSTM_Pytorch_MUltichannel.forward)
# ----------------------------------------------------------------------------

def forward(params, x, sequence_length):
    # x: (N, ndim, L)  ->  out: (N, 1)
    B0, C, L = x.shape
    T = sequence_length
    assert T == L

    # Pad batch (sublane dim) to a multiple of 8; padded rows are sliced off.
    B = max(8, ((B0 + 7) // 8) * 8)
    if B != B0:
        x = jnp.pad(x, ((0, B - B0), (0, 0), (0, 0)))
    x = x.astype(jnp.float32)

    # --- ConstantPad1d((1,2)) + Conv1d(C->16, k=4) via time-major im2col ---
    K = 4
    xp = jnp.pad(x, ((0, 0), (0, 0), (1, 2)))                          # (B, C, L+3)
    cols = jnp.stack([xp[:, :, j:j + L] for j in range(K)], axis=-1)   # (B, C, L, K)
    patches = jnp.transpose(cols, (2, 0, 1, 3)).reshape(T * B, C * K)  # row = t*B + b

    # --- Layer 1: conv matmul fused with (fwd|bwd) input projection ---------
    p1 = params["lstm1"]
    wc_t = params["conv_w"].reshape(16, C * K).T                       # (C*K, 16)
    w_ih1_t, b1_cat = _lstm_cat_weights(p1)                            # (16, 512), (512,)
    gx1 = _pallas_conv_inproj(patches, wc_t, params["conv_b"], w_ih1_t, b1_cat)
    gx1 = gx1.reshape(T, B, 8 * 64)
    h1 = _pallas_bilstm(gx1, p1["w_hh_f"].T, p1["w_hh_b"].T, 64)       # (T, B, 128)

    # --- Layer 2 -------------------------------------------------------------
    p2 = params["lstm2"]
    w_ih2_t, b2_cat = _lstm_cat_weights(p2)                            # (128, 1024)
    gx2 = _pallas_matmul_bias(h1.reshape(T * B, 128), w_ih2_t, b2_cat)
    gx2 = gx2.reshape(T, B, 8 * 128)
    h2 = _pallas_bilstm(gx2, p2["w_hh_f"].T, p2["w_hh_b"].T, 128)      # (T, B, 256)

    # --- Head: fc_1 + tanh + fc_2 (fused) ------------------------------------
    # PyTorch flattens the batch-first (B, T, 256) output.
    flat = jnp.transpose(h2, (1, 0, 2)).reshape(B, T * 256)
    out = _pallas_head(flat, params["fc1_w"].T, params["fc1_b"],
                       params["fc2_w"].T, params["fc2_b"])             # (B, 1)
    return out[:B0]


# ----------------------------------------------------------------------------
# Main
# ----------------------------------------------------------------------------

if __name__ == "__main__":
    BATCH = 2
    NDIM = 2
    SEQ_LEN = 8

    key = jax.random.PRNGKey(0)
    k_param, k_x = jax.random.split(key)

    params = init_params(k_param, SEQ_LEN, NDIM)
    x = jax.random.normal(k_x, (BATCH, NDIM, SEQ_LEN), jnp.float32)

    out = forward(params, x, SEQ_LEN)
    out = jax.block_until_ready(out)

    assert out.shape == (BATCH, 1), out.shape
    assert out.dtype == jnp.float32
    print("KERNEL_OK")
</pallas_src>

<mosaic_0001>
module attributes {stable_mosaic.version = 11 : i64} {
  func.func @_conv_inproj_kernel(%arg0: memref<64x8xf32, #tpu.memory_space<vmem>>, %arg1: memref<8x16xf32, #tpu.memory_space<vmem>>, %arg2: memref<1x16xf32, #tpu.memory_space<vmem>>, %arg3: memref<16x512xf32, #tpu.memory_space<vmem>>, %arg4: memref<1x512xf32, #tpu.memory_space<vmem>>, %arg5: memref<64x512xf32, #tpu.memory_space<vmem>>) attributes {dimension_semantics = [], scalar_prefetch = 0 : i64, scratch_operands = 0 : i64, tpu.core_type = #tpu.core_type<tc>} {
    %c0 = arith.constant 0 : index
    %c0_0 = arith.constant 0 : index
    %0 = vector.load %arg0[%c0, %c0_0] : memref<64x8xf32, #tpu.memory_space<vmem>>, vector<64x8xf32>
    %c0_1 = arith.constant 0 : index
    %c0_2 = arith.constant 0 : index
    %1 = vector.load %arg1[%c0_1, %c0_2] : memref<8x16xf32, #tpu.memory_space<vmem>>, vector<8x16xf32>
    %cst = arith.constant dense<0.000000e+00> : vector<64x16xf32>
    %2 = tpu.matmul %0, %1, %cst {dimension_numbers = #tpu.dot_dimension_numbers<[1], [0], [0], [1], [0, 0, 1, 1], [], []>} : vector<64x8xf32>, vector<8x16xf32>, vector<64x16xf32> -> vector<64x16xf32>
    %c0_3 = arith.constant 0 : index
    %c0_4 = arith.constant 0 : index
    %3 = vector.load %arg2[%c0_3, %c0_4] : memref<1x16xf32, #tpu.memory_space<vmem>>, vector<1x16xf32>
    %4 = vector.broadcast %3 : vector<1x16xf32> to vector<64x16xf32>
    %5 = arith.addf %2, %4 : vector<64x16xf32>
    %c0_5 = arith.constant 0 : index
    %c0_6 = arith.constant 0 : index
    %6 = vector.load %arg3[%c0_5, %c0_6] : memref<16x512xf32, #tpu.memory_space<vmem>>, vector<16x512xf32>
    %cst_7 = arith.constant dense<0.000000e+00> : vector<64x512xf32>
    %7 = tpu.matmul %5, %6, %cst_7 {dimension_numbers = #tpu.dot_dimension_numbers<[1], [0], [0], [1], [0, 0, 1, 1], [], []>} : vector<64x16xf32>, vector<16x512xf32>, vector<64x512xf32> -> vector<64x512xf32>
    %c0_8 = arith.constant 0 : index
    %c0_9 = arith.constant 0 : index
    %8 = vector.load %arg4[%c0_8, %c0_9] : memref<1x512xf32, #tpu.memory_space<vmem>>, vector<1x512xf32>
    %9 = vector.broadcast %8 : vector<1x512xf32> to vector<64x512xf32>
    %10 = arith.addf %7, %9 : vector<64x512xf32>
    %c0_10 = arith.constant 0 : index
    %c0_11 = arith.constant 0 : index
    %11 = vector.load %arg5[%c0_10, %c0_11] : memref<64x512xf32, #tpu.memory_space<vmem>>, vector<64x512xf32>
    tpu.vector_store %arg5[%c0_10, %c0_11], %10 {strides = array<i32>} : memref<64x512xf32, #tpu.memory_space<vmem>>, vector<64x512xf32>,
    return
  }
}

</mosaic_0001>

<bundles_post_ra>
// kernel: tpu_custom_call.1
= control target key start
LH: loop header
LB: loop body
LE: loop exit
PB: predicated region body
PF: predicated region fallthrough
CT: control target
= control target key end

     0   :  { %10 = vsyncpa [#allocation3], 0  ;;  %s646_s0 = inlined_call_operand.vmem [shape: f32[64,8], index: 0, kind: input, shape index: {}]   ;;  %s647_s1 = inlined_call_operand.vmem [shape: f32[8,16], index: 1, kind: input, shape index: {}]   ;;  %s648_s2 = inlined_call_operand.vmem [shape: f32[1,16], index: 2, kind: input, shape index: {}]   ;;  %s649_s3 = inlined_call_operand.vmem [shape: f32[16,512], index: 3, kind: input, shape index: {}]   ;;  %s650_s4 = inlined_call_operand.hbm [shape: f32[1,512], index: 4, kind: input, shape index: {}]   ;;  %s651_s5 = inlined_call_operand.hbm [shape: f32[64,512], index: 5, kind: output, shape index: {}]  }
   0x1   :  { %11 = vsyncpa [#allocation4], 0  ;;  %s25_s20 = sshll.u32 %s650_s4, 4  ;;  %s472_s21 = smov [#allocation2]   ;;  %s26_s20 = int_to_ptr.hbm [resolvable:$true] %s25_s20 }
   0x2   :  { %s27_s22 = sshll.u32 %s472_s21, 4  ;;  %s28_s22 = int_to_ptr.vmem [resolvable:$true] %s27_s22 }
   0x3   :  { %30 = dma.hbm_to_vmem [thread:$0]  %s26_s20, 64, %s28_s22, [#allocation3]  }
   0x4   :  { %468 = dma.done.wait [#allocation3], 64  }
   0x5   :  { %469 = vsyncadd [#allocation3], 4294967232  ;;  %vm48_vm0 = vcmask 64512   ;;  %v43_v0 = vld [vmem:[%s647_s1] sm:$0xff]  ;;  %v37_v2 = vld [vmem:[%s646_s0 + $0x10] sm:$0xff]  ;;  %vm132_vm1 = vcmask 130048  }
   0x6   :  { %v35_v1 = vld [vmem:[%s646_s0] sm:$0xff]  ;;  %88 = vmatpush.msra.mxu0 %v43_v0  ;;  %412 = vmatpush.msra.mxu1 %v43_v0  ;;  %v41_v4 = vld [vmem:[%s646_s0 + $0x30] sm:$0xff]  ;;  %v119_v5 = vld [vmem:[%s649_s3 + $0x28] sm:$0xff]  ;;  %s359_s6 = sshll.u32 %s651_s5, 4  ;;  %s474_s7 = smov 512   ;;  %s360_s6 = int_to_ptr.hbm [resolvable:$true] %s359_s6 }
   0x7   :  { %v39_v3 = vld [vmem:[%s646_s0 + $0x20] sm:$0xff]  ;;  %372 = vmatmul.msk.f32.vlgmr.msra.gmra.mxu0 %vm48_vm0, %v35_v1  ;;  %374 = vmatmul.msk.f32.vlgmr.msra.gmra.mxu1 %vm48_vm0, %v37_v2  ;;  %v120_v6 = vld [vmem:[%s649_s3 + $0x30] sm:$0xff]  ;;  %v121_v8 = vld [vmem:[%s649_s3 + $0x38] sm:$0xff]  ;;  %s475_s8 = smov 32  }
   0x8   :  { %413 = vmatpush.msra.mxu2 %v43_v0  ;;  %414 = vmatpush.msra.mxu3 %v43_v0  ;;  %v118_v7 = vld [vmem:[%s649_s3 + $0x20] sm:$0xff]  ;;  %v115_v9 = vld [vmem:[%s649_s3 + $0x8] sm:$0xff]  ;;  %v116_v10 = vld [vmem:[%s649_s3 + $0x10] sm:$0xff] }
   0x9   :  { %376 = vmatmul.msk.f32.vlgmr.msra.gmra.mxu2 %vm48_vm0, %v39_v3  ;;  %378 = vmatmul.msk.f32.vlgmr.msra.gmra.mxu3 %vm48_vm0, %v41_v4  ;;  %v36_v11 = vld [vmem:[%s646_s0 + $0x8] sm:$0xff]  ;;  %v38_v12 = vld [vmem:[%s646_s0 + $0x18] sm:$0xff]  ;;  %v114_v15 = vld [vmem:[%s649_s3] sm:$0xff] }
   0xa   :  { %212 = vmatpush.msrb.mxu2 %v119_v5  ;;  %253 = vmatpush.msrb.mxu3 %v120_v6  ;;  %v40_v13 = vld [vmem:[%s646_s0 + $0x28] sm:$0xff]  ;;  %v42_v14 = vld [vmem:[%s646_s0 + $0x38] sm:$0xff]  ;;  %v419_v17 = vld [vmem:[%s648_s2] ss:$0 sm:$0xff]  ;;  %s473_s2 = smov [#allocation5]  }
   0xb   :  { %171 = vmatpush.msrb.mxu1 %v118_v7  ;;  %294 = vmatpush.msrb.mxu0 %v121_v8  ;;  %v117_v16 = vld [vmem:[%s649_s3 + $0x18] sm:$0xff]  ;;  %v122_v34 = vld [vmem:[#allocation2] sm:$0xf]  ;;  %s357_s3 = sshll.u32 %s473_s2, 4  ;;  %s358_s3 = int_to_ptr.vmem [resolvable:$true] %s357_s3 }
   0xc   :  { %213 = vmatpush.msrb.mxu2 %v115_v9  ;;  %254 = vmatpush.msrb.mxu3 %v116_v10  ;;  %v603_v35 = vperm.slane %v122_v34, 0  ;;  %v605_v36 = vperm.slane %v122_v34, 3  ;;  %v609_v41 = vperm.slane %v122_v34, 1  ;;  %v611_v42 = vperm.slane %v122_v34, 2 }
   0xd   :  { %172 = vmatpush.msrb.mxu1 %v114_v15  ;;  %295 = vmatpush.msrb.mxu0 %v117_v16 }
   0xf   :  { %373 = vmatmul.msk.f32.gmra.mxu0 %vm48_vm0, %v36_v11  ;;  %375 = vmatmul.msk.f32.gmra.mxu1 %vm48_vm0, %v38_v12 }
  0x11   :  { %377 = vmatmul.msk.f32.gmra.mxu2 %vm48_vm0, %v40_v13  ;;  %379 = vmatmul.msk.f32.gmra.mxu3 %vm48_vm0, %v42_v14 }
  0x84   :  { %v90_v18 = vpop.f32.mrf.mxu0  ;;  %v96_v22 = vpop.f32.mrf.mxu1 }
  0x85   :  { %v91_v19 = vadd.f32 %v419_v17, %v90_v18  ;;  %v97_v23 = vadd.f32 %v419_v17, %v96_v22 }
  0x87   :  { %380 = vmatmul.msk.f32.vlgmr.msrb.gmra.mxu1 %vm132_vm1, %v91_v19  ;;  %388 = vmatmul.msk.f32.vlgmr.msrb.gmra.mxu2 %vm132_vm1, %v91_v19 }
  0x88   :  { %396 = vmatmul.msk.f32.vlgmr.msrb.gmra.mxu3 %vm132_vm1, %v91_v19  ;;  %404 = vmatmul.msk.f32.vlgmr.msrb.gmra.mxu0 %vm132_vm1, %v91_v19 }
  0x8c   :  { %v93_v20 = vpop.f32.mrf.mxu0  ;;  %v99_v24 = vpop.f32.mrf.mxu1 }
  0x8d   :  { %v94_v21 = vadd.f32 %v419_v17, %v93_v20  ;;  %v100_v25 = vadd.f32 %v419_v17, %v99_v24  ;;  %v102_v26 = vpop.f32.mrf.mxu2  ;;  %v108_v30 = vpop.f32.mrf.mxu3 }
  0x8e   :  { %v103_v27 = vadd.f32 %v419_v17, %v102_v26  ;;  %v109_v31 = vadd.f32 %v419_v17, %v108_v30 }
  0x8f   :  { %381 = vmatmul.msk.f32.gmra.mxu1 %vm132_vm1, %v94_v21  ;;  %389 = vmatmul.msk.f32.gmra.mxu2 %vm132_vm1, %v94_v21 }
  0x90   :  { %397 = vmatmul.msk.f32.gmra.mxu3 %vm132_vm1, %v94_v21  ;;  %405 = vmatmul.msk.f32.gmra.mxu0 %vm132_vm1, %v94_v21 }
  0x95   :  { %v105_v28 = vpop.f32.mrf.mxu2  ;;  %v111_v32 = vpop.f32.mrf.mxu3 }
  0x96   :  { %v106_v29 = vadd.f32 %v419_v17, %v105_v28  ;;  %v112_v33 = vadd.f32 %v419_v17, %v111_v32 }
  0x97   :  { %382 = vmatmul.msk.f32.gmra.mxu1 %vm132_vm1, %v97_v23  ;;  %390 = vmatmul.msk.f32.gmra.mxu2 %vm132_vm1, %v97_v23 }
  0x98   :  { %398 = vmatmul.msk.f32.gmra.mxu3 %vm132_vm1, %v97_v23  ;;  %406 = vmatmul.msk.f32.gmra.mxu0 %vm132_vm1, %v97_v23 }
  0x9f   :  { %383 = vmatmul.msk.f32.gmra.mxu1 %vm132_vm1, %v100_v25  ;;  %391 = vmatmul.msk.f32.gmra.mxu2 %vm132_vm1, %v100_v25 }
  0xa0   :  { %399 = vmatmul.msk.f32.gmra.mxu3 %vm132_vm1, %v100_v25  ;;  %407 = vmatmul.msk.f32.gmra.mxu0 %vm132_vm1, %v100_v25 }
  0xa7   :  { %384 = vmatmul.msk.f32.gmra.mxu1 %vm132_vm1, %v103_v27  ;;  %392 = vmatmul.msk.f32.gmra.mxu2 %vm132_vm1, %v103_v27 }
  0xa8   :  { %400 = vmatmul.msk.f32.gmra.mxu3 %vm132_vm1, %v103_v27  ;;  %408 = vmatmul.msk.f32.gmra.mxu0 %vm132_vm1, %v103_v27 }
  0xaf   :  { %385 = vmatmul.msk.f32.gmra.mxu1 %vm132_vm1, %v106_v29  ;;  %393 = vmatmul.msk.f32.gmra.mxu2 %vm132_vm1, %v106_v29 }
  0xb0   :  { %401 = vmatmul.msk.f32.gmra.mxu3 %vm132_vm1, %v106_v29  ;;  %409 = vmatmul.msk.f32.gmra.mxu0 %vm132_vm1, %v106_v29 }
  0xb7   :  { %386 = vmatmul.msk.f32.gmra.mxu1 %vm132_vm1, %v109_v31  ;;  %394 = vmatmul.msk.f32.gmra.mxu2 %vm132_vm1, %v109_v31 }
  0xb8   :  { %402 = vmatmul.msk.f32.gmra.mxu3 %vm132_vm1, %v109_v31  ;;  %410 = vmatmul.msk.f32.gmra.mxu0 %vm132_vm1, %v109_v31 }
  0xbf   :  { %387 = vmatmul.msk.f32.gmra.mxu1 %vm132_vm1, %v112_v33  ;;  %395 = vmatmul.msk.f32.gmra.mxu2 %vm132_vm1, %v112_v33 }
  0xc0   :  { %403 = vmatmul.msk.f32.gmra.mxu3 %vm132_vm1, %v112_v33  ;;  %411 = vmatmul.msk.f32.gmra.mxu0 %vm132_vm1, %v112_v33 }
 0x104   :  { %v174_v37 = vpop.f32.mrf.mxu1 }
 0x105   :  { %v175_v38 = vadd.f32 %v174_v37, %v603_v35  ;;  %v297_v39 = vpop.f32.mrf.mxu0 }
 0x106   :  { %v298_v40 = vadd.f32 %v297_v39, %v605_v36 }
 0x107   :  { %321 = vst [vmem:[#allocation5] sm:$0xff] %v175_v38 }
 0x108   :  { %324 = vst [vmem:[#allocation5 + $0x18] sm:$0xff] %v298_v40 }
 0x10a   :  { %v215_v43 = vpop.f32.mrf.mxu2 }
 0x10b   :  { %v216_v44 = vadd.f32 %v215_v43, %v609_v41  ;;  %v256_v45 = vpop.f32.mrf.mxu3 }
 0x10c   :  { %v257_v46 = vadd.f32 %v256_v45, %v611_v42  ;;  %v177_v47 = vpop.f32.mrf.mxu1 }
 0x10d   :  { %322 = vst [vmem:[#allocation5 + $0x8] sm:$0xff] %v216_v44  ;;  %v178_v48 = vadd.f32 %v177_v47, %v603_v35  ;;  %v300_v49 = vpop.f32.mrf.mxu0 }
 0x10e   :  { %323 = vst [vmem:[#allocation5 + $0x10] sm:$0xff] %v257_v46  ;;  %v301_v50 = vadd.f32 %v300_v49, %v605_v36 }
 0x10f   :  { %325 = vst [vmem:[#allocation5 + $0x20] sm:$0xff] %v178_v48 }
 0x110   :  { %328 = vst [vmem:[#allocation5 + $0x38] sm:$0xff] %v301_v50 }
 0x112   :  { %v218_v51 = vpop.f32.mrf.mxu2 }
 0x113   :  { %v219_v52 = vadd.f32 %v218_v51, %v609_v41  ;;  %v259_v53 = vpop.f32.mrf.mxu3 }
 0x114   :  { %v260_v54 = vadd.f32 %v259_v53, %v611_v42  ;;  %v180_v55 = vpop.f32.mrf.mxu1 }
 0x115   :  { %326 = vst [vmem:[#allocation5 + $0x28] sm:$0xff] %v219_v52  ;;  %v181_v56 = vadd.f32 %v180_v55, %v603_v35  ;;  %v303_v57 = vpop.f32.mrf.mxu0 }
 0x116   :  { %327 = vst [vmem:[#allocation5 + $0x30] sm:$0xff] %v260_v54  ;;  %v304_v58 = vadd.f32 %v303_v57, %v605_v36 }
 0x117   :  { %329 = vst [vmem:[#allocation5 + $0x40] sm:$0xff] %v181_v56 }
 0x118   :  { %332 = vst [vmem:[#allocation5 + $0x58] sm:$0xff] %v304_v58 }
 0x11a   :  { %v221_v59 = vpop.f32.mrf.mxu2 }
 0x11b   :  { %v222_v60 = vadd.f32 %v221_v59, %v609_v41  ;;  %v262_v61 = vpop.f32.mrf.mxu3 }
 0x11c   :  { %v263_v62 = vadd.f32 %v262_v61, %v611_v42  ;;  %v183_v63 = vpop.f32.mrf.mxu1 }
 0x11d   :  { %330 = vst [vmem:[#allocation5 + $0x48] sm:$0xff] %v222_v60  ;;  %v184_v0 = vadd.f32 %v183_v63, %v603_v35  ;;  %v306_v1 = vpop.f32.mrf.mxu0 }
 0x11e   :  { %331 = vst [vmem:[#allocation5 + $0x50] sm:$0xff] %v263_v62  ;;  %v307_v2 = vadd.f32 %v306_v1, %v605_v36 }
 0x11f   :  { %333 = vst [vmem:[#allocation5 + $0x60] sm:$0xff] %v184_v0 }
 0x120   :  { %336 = vst [vmem:[#allocation5 + $0x78] sm:$0xff] %v307_v2 }
 0x122   :  { %v224_v3 = vpop.f32.mrf.mxu2 }
 0x123   :  { %v225_v4 = vadd.f32 %v224_v3, %v609_v41  ;;  %v265_v5 = vpop.f32.mrf.mxu3 }
 0x124   :  { %v266_v6 = vadd.f32 %v265_v5, %v611_v42  ;;  %v186_v7 = vpop.f32.mrf.mxu1 }
 0x125   :  { %334 = vst [vmem:[#allocation5 + $0x68] sm:$0xff] %v225_v4  ;;  %v187_v8 = vadd.f32 %v186_v7, %v603_v35  ;;  %v309_v9 = vpop.f32.mrf.mxu0 }
 0x126   :  { %335 = vst [vmem:[#allocation5 + $0x70] sm:$0xff] %v266_v6  ;;  %v310_v10 = vadd.f32 %v309_v9, %v605_v36 }
 0x127   :  { %337 = vst [vmem:[#allocation5 + $0x80] sm:$0xff] %v187_v8 }
 0x128   :  { %340 = vst [vmem:[#allocation5 + $0x98] sm:$0xff] %v310_v10 }
 0x12a   :  { %v227_v11 = vpop.f32.mrf.mxu2 }
 0x12b   :  { %v228_v12 = vadd.f32 %v227_v11, %v609_v41  ;;  %v268_v13 = vpop.f32.mrf.mxu3 }
 0x12c   :  { %v269_v14 = vadd.f32 %v268_v13, %v611_v42  ;;  %v189_v15 = vpop.f32.mrf.mxu1 }
 0x12d   :  { %338 = vst [vmem:[#allocation5 + $0x88] sm:$0xff] %v228_v12  ;;  %v190_v16 = vadd.f32 %v189_v15, %v603_v35  ;;  %v312_v17 = vpop.f32.mrf.mxu0 }
 0x12e   :  { %339 = vst [vmem:[#allocation5 + $0x90] sm:$0xff] %v269_v14  ;;  %v313_v18 = vadd.f32 %v312_v17, %v605_v36 }
 0x12f   :  { %341 = vst [vmem:[#allocation5 + $0xa0] sm:$0xff] %v190_v16 }
 0x130   :  { %344 = vst [vmem:[#allocation5 + $0xb8] sm:$0xff] %v313_v18 }
 0x132   :  { %v230_v19 = vpop.f32.mrf.mxu2 }
 0x133   :  { %v231_v20 = vadd.f32 %v230_v19, %v609_v41  ;;  %v271_v21 = vpop.f32.mrf.mxu3 }
 0x134   :  { %v272_v22 = vadd.f32 %v271_v21, %v611_v42  ;;  %v192_v23 = vpop.f32.mrf.mxu1 }
 0x135   :  { %342 = vst [vmem:[#allocation5 + $0xa8] sm:$0xff] %v231_v20  ;;  %v193_v24 = vadd.f32 %v192_v23, %v603_v35  ;;  %v315_v25 = vpop.f32.mrf.mxu0 }
 0x136   :  { %343 = vst [vmem:[#allocation5 + $0xb0] sm:$0xff] %v272_v22  ;;  %v316_v26 = vadd.f32 %v315_v25, %v605_v36 }
 0x137   :  { %345 = vst [vmem:[#allocation5 + $0xc0] sm:$0xff] %v193_v24 }
 0x138   :  { %348 = vst [vmem:[#allocation5 + $0xd8] sm:$0xff] %v316_v26 }
 0x13a   :  { %v233_v27 = vpop.f32.mrf.mxu2 }
 0x13b   :  { %v234_v28 = vadd.f32 %v233_v27, %v609_v41  ;;  %v274_v29 = vpop.f32.mrf.mxu3 }
 0x13c   :  { %v275_v30 = vadd.f32 %v274_v29, %v611_v42  ;;  %v195_v31 = vpop.f32.mrf.mxu1 }
 0x13d   :  { %346 = vst [vmem:[#allocation5 + $0xc8] sm:$0xff] %v234_v28  ;;  %v196_v32 = vadd.f32 %v195_v31, %v603_v35  ;;  %v318_v33 = vpop.f32.mrf.mxu0 }
 0x13e   :  { %347 = vst [vmem:[#allocation5 + $0xd0] sm:$0xff] %v275_v30  ;;  %v319_v34 = vadd.f32 %v318_v33, %v605_v36 }
 0x13f   :  { %349 = vst [vmem:[#allocation5 + $0xe0] sm:$0xff] %v196_v32 }
 0x140   :  { %352 = vst [vmem:[#allocation5 + $0xf8] sm:$0xff] %v319_v34 }
 0x142   :  { %v236_v37 = vpop.f32.mrf.mxu2 }
 0x143   :  { %v237_v38 = vadd.f32 %v236_v37, %v609_v41  ;;  %v277_v39 = vpop.f32.mrf.mxu3 }
 0x144   :  { %v278_v35 = vadd.f32 %v277_v39, %v611_v42 }
 0x145   :  { %350 = vst [vmem:[#allocation5 + $0xe8] sm:$0xff] %v237_v38 }
 0x146   :  { %351 = vst [vmem:[#allocation5 + $0xf0] sm:$0xff] %v278_v35 }
 0x147   :  { %365 = dma.vmem_to_hbm [thread:$0]  %s358_s3, 4096, %s360_s6, [#allocation4], %s474_s7, %s474_s7, %s475_s8  }
 0x148   :  { %470 = dma.done.wait [#allocation4], 4096  }
 0x149   :  { %471 = vsyncadd [#allocation4], 4294963200 }
 0x14a   :  { %370 = vsyncpa [#allocation3], 1 }
 0x14b   :  { %371 = vsyncpa [#allocation4], 1 }

</bundles_post_ra>
